<compile_context>
chip_gen: v5e
topology: v5e:2x2
jax: 0.10.0
libtpu: 0.0.40
codegen_flags: <defaults>
</compile_context>

<pallas_src>
import numpy as np
import jax
import jax.numpy as jnp
from jax.experimental import pallas as pl
from jax.experimental.pallas import tpu as pltpu  # noqa: F401  (TPU backend)

# ---------------- model hyper-parameters (small, consistent with module) ----
B = 2           # batch
S = 8           # sequence length
E = 32          # emb_dim (d_model)
NH = 4          # num_heads
HD = E // NH    # head dim
HID = 64        # dim_feedforward
EPS = 1e-5      # LayerNorm eps (PyTorch default)
BS = B * S      # flattened rows


def _layer_norm(x, g, b):
    mu = jnp.mean(x, axis=-1, keepdims=True)
    var = jnp.mean((x - mu) ** 2, axis=-1, keepdims=True)
    return (x - mu) * jax.lax.rsqrt(var + EPS) * g + b


def encoder_kernel(x_ref, wf_ref, bf_ref, w1_ref, b1_ref, w2_ref,
                   vecs_ref, mask_ref, out_ref):
    x = x_ref[...].astype(jnp.float32)                       # (BS, E)

    # ---- fused projection: x @ [Wq | Wk | Wvo_0..Wvo_{NH-1}] ----
    proj = jnp.dot(x, wf_ref[...],
                   preferred_element_type=jnp.float32) + bf_ref[...]
    q = proj[:, :E]                                           # (BS, E)
    k = proj[:, E:2 * E]                                      # (BS, E)

    neg = mask_ref[...]                                       # (BS, BS) static mask
    vecs = vecs_ref[...]                                      # (8, E) packed vectors
    bo, b2 = vecs[0:1, :], vecs[1:2, :]
    g1, be1 = vecs[2:3, :], vecs[3:4, :]
    g2, be2 = vecs[4:5, :], vecs[5:6, :]
    g3, be3 = vecs[6:7, :], vecs[7:8, :]

    scale = 1.0 / (HD ** 0.5)
    attn = jnp.zeros((BS, E), jnp.float32)
    for h in range(NH):                                       # static unroll, NH=4
        lo, hi = h * HD, (h + 1) * HD
        qh, kh = q[:, lo:hi], k[:, lo:hi]                     # (BS, HD)
        vph = proj[:, 2 * E + h * E: 2 * E + (h + 1) * E]     # (BS, E)  = x @ Wvo_h
        # scores: 'qd,kd->qk' (contract last dims, no explicit transpose)
        s = jax.lax.dot_general(qh, kh, (((1,), (1,)), ((), ())),
                                preferred_element_type=jnp.float32)
        s = s * scale + neg                                   # (BS, BS)
        s = s - jnp.max(s, axis=-1, keepdims=True)
        p = jnp.exp(s)
        p = p / jnp.sum(p, axis=-1, keepdims=True)            # exact normalization
        # Wo already folded into vph, so the head contributes directly.
        attn = attn + jnp.dot(p, vph, preferred_element_type=jnp.float32)
    attn = attn + bo                                          # bo' = bo + bv @ Wo

    # ---- residual + norm1 (post-norm encoder layer) ----
    x1 = _layer_norm(x + attn, g1, be1)

    # ---- feed-forward (relu) ----
    ff = jnp.dot(x1, w1_ref[...], preferred_element_type=jnp.float32) + b1_ref[...]
    ff = jnp.maximum(ff, 0.0)
    ff = jnp.dot(ff, w2_ref[...], preferred_element_type=jnp.float32) + b2

    # ---- residual + norm2 ----
    x2 = _layer_norm(x1 + ff, g2, be2)

    # ---- outer LayerNorm (self.norm) ----
    out = _layer_norm(x2, g3, be3)

    out_ref[...] = out.astype(out_ref.dtype)


def prepare_params(params):
    """One-time host-side packing: fused weights, folded Wo, static mask."""
    (wq, wk, wv, bq, bk, bv, wo, bo,
     w1, b1, w2, b2, g1, be1, g2, be2, g3, be3) = params

    # Fold output projection into the value projection, per head.
    wvo = [wv[:, h * HD:(h + 1) * HD] @ wo[h * HD:(h + 1) * HD, :]
           for h in range(NH)]                                # NH x (E, E)
    w_fused = jnp.concatenate([wq, wk] + wvo, axis=1)         # (E, 2E + NH*E)
    b_fused = jnp.concatenate(
        [bq, bk, jnp.zeros((1, NH * E), jnp.float32)], axis=1)  # (1, 2E + NH*E)

    bo_p = bo + bv @ wo                                       # folded value bias
    vecs = jnp.concatenate([bo_p, b2, g1, be1, g2, be2, g3, be3], axis=0)  # (8, E)

    # Static block-diagonal attention mask (batch elements never cross-attend).
    row = np.arange(BS) // S
    mask = jnp.asarray(
        np.where(row[:, None] == row[None, :], 0.0, -1e30).astype(np.float32))

    return (w_fused, b_fused, w1, b1, w2, vecs, mask)


def transformer_encoder(x, prepared):
    w_fused, b_fused, w1, b1, w2, vecs, mask = prepared
    x2d = x.reshape(BS, E)

    # Single-step kernel: no grid, no pipeline scaffolding; every operand is a
    # whole-array VMEM ref (total footprint ~40 KiB, far under any VMEM limit).
    out = pl.pallas_call(
        encoder_kernel,
        out_shape=jax.ShapeDtypeStruct((BS, E), x.dtype),
    )(x2d, w_fused, b_fused, w1, b1, w2, vecs, mask)

    return out.reshape(B, S, E)


def init_params(key):
    ks = jax.random.split(key, 8)
    scale = 0.1
    # PyTorch stores linear weights as (out, in); we pre-transpose to (in, out)
    # so the kernel can do x @ W directly.
    wq = scale * jax.random.normal(ks[0], (E, E), jnp.float32)
    wk = scale * jax.random.normal(ks[1], (E, E), jnp.float32)
    wv = scale * jax.random.normal(ks[2], (E, E), jnp.float32)
    bq = scale * jax.random.normal(ks[3], (1, E), jnp.float32)
    bk = jnp.zeros((1, E), jnp.float32)
    bv = scale * jax.random.normal(ks[4], (1, E), jnp.float32)
    wo = scale * jax.random.normal(ks[5], (E, E), jnp.float32)
    bo = jnp.zeros((1, E), jnp.float32)
    w1 = scale * jax.random.normal(ks[6], (E, HID), jnp.float32)
    b1 = jnp.zeros((1, HID), jnp.float32)
    w2 = scale * jax.random.normal(ks[7], (HID, E), jnp.float32)
    b2 = jnp.zeros((1, E), jnp.float32)
    g1, be1 = jnp.ones((1, E), jnp.float32), jnp.zeros((1, E), jnp.float32)
    g2, be2 = jnp.ones((1, E), jnp.float32), jnp.zeros((1, E), jnp.float32)
    g3, be3 = jnp.ones((1, E), jnp.float32), jnp.zeros((1, E), jnp.float32)
    return (wq, wk, wv, bq, bk, bv, wo, bo, w1, b1, w2, b2,
            g1, be1, g2, be2, g3, be3)


def reference(x, params):
    """Pure-JAX reference mirroring nn.TransformerEncoderLayer (post-norm, eval)."""
    (wq, wk, wv, bq, bk, bv, wo, bo,
     w1, b1, w2, b2, g1, be1, g2, be2, g3, be3) = params

    def ln(x, g, b):
        mu = jnp.mean(x, axis=-1, keepdims=True)
        var = jnp.mean((x - mu) ** 2, axis=-1, keepdims=True)
        return (x - mu) / jnp.sqrt(var + EPS) * g + b

    q = x @ wq + bq
    k = x @ wk + bk
    v = x @ wv + bv
    qh = q.reshape(B, S, NH, HD).transpose(0, 2, 1, 3)
    kh = k.reshape(B, S, NH, HD).transpose(0, 2, 1, 3)
    vh = v.reshape(B, S, NH, HD).transpose(0, 2, 1, 3)
    s = jnp.einsum("bhqd,bhkd->bhqk", qh, kh) / (HD ** 0.5)
    p = jax.nn.softmax(s, axis=-1)
    a = jnp.einsum("bhqk,bhkd->bhqd", p, vh).transpose(0, 2, 1, 3).reshape(B, S, E)
    a = a @ wo + bo
    x1 = ln(x + a, g1, be1)
    ff = jnp.maximum(x1 @ w1 + b1, 0.0) @ w2 + b2
    x2 = ln(x1 + ff, g2, be2)
    return ln(x2, g3, be3)


if __name__ == "__main__":
    key = jax.random.PRNGKey(0)
    kx, kp = jax.random.split(key)
    x = jax.random.normal(kx, (B, S, E), jnp.float32)
    params = init_params(kp)

    prepared = prepare_params(params)          # one-time packing, outside the call
    encoder_fn = jax.jit(transformer_encoder)

    out = encoder_fn(x, prepared)
    out = jax.block_until_ready(out)

    ref = reference(x, params)
    assert out.shape == (B, S, E)
    assert jnp.allclose(out, ref, atol=1e-4, rtol=1e-4), \
        f"max err {jnp.max(jnp.abs(out - ref))}"
    print("KERNEL_OK")
</pallas_src>

<mosaic_0001>
module attributes {stable_mosaic.version = 11 : i64} {
  func.func @encoder_kernel(%arg0: memref<16x32xf32, #tpu.memory_space<vmem>>, %arg1: memref<32x192xf32, #tpu.memory_space<vmem>>, %arg2: memref<1x192xf32, #tpu.memory_space<vmem>>, %arg3: memref<32x64xf32, #tpu.memory_space<vmem>>, %arg4: memref<1x64xf32, #tpu.memory_space<vmem>>, %arg5: memref<64x32xf32, #tpu.memory_space<vmem>>, %arg6: memref<8x32xf32, #tpu.memory_space<vmem>>, %arg7: memref<16x16xf32, #tpu.memory_space<vmem>>, %arg8: memref<16x32xf32, #tpu.memory_space<vmem>>) attributes {dimension_semantics = [], scalar_prefetch = 0 : i64, scratch_operands = 0 : i64, tpu.core_type = #tpu.core_type<tc>} {
    %c0 = arith.constant 0 : index
    %c0_0 = arith.constant 0 : index
    %0 = vector.load %arg0[%c0, %c0_0] : memref<16x32xf32, #tpu.memory_space<vmem>>, vector<16x32xf32>
    %c0_1 = arith.constant 0 : index
    %c0_2 = arith.constant 0 : index
    %1 = vector.load %arg1[%c0_1, %c0_2] : memref<32x192xf32, #tpu.memory_space<vmem>>, vector<32x192xf32>
    %cst = arith.constant dense<0.000000e+00> : vector<16x192xf32>
    %2 = tpu.matmul %0, %1, %cst {dimension_numbers = #tpu.dot_dimension_numbers<[1], [0], [0], [1], [0, 0, 1, 1], [], []>} : vector<16x32xf32>, vector<32x192xf32>, vector<16x192xf32> -> vector<16x192xf32>
    %c0_3 = arith.constant 0 : index
    %c0_4 = arith.constant 0 : index
    %3 = vector.load %arg2[%c0_3, %c0_4] : memref<1x192xf32, #tpu.memory_space<vmem>>, vector<1x192xf32>
    %4 = vector.broadcast %3 : vector<1x192xf32> to vector<16x192xf32>
    %5 = arith.addf %2, %4 : vector<16x192xf32>
    %6 = vector.extract_strided_slice %5 {offsets = [0, 0], sizes = [16, 32], strides = [1, 1]} : vector<16x192xf32> to vector<16x32xf32>
    %7 = vector.extract_strided_slice %5 {offsets = [0, 32], sizes = [16, 32], strides = [1, 1]} : vector<16x192xf32> to vector<16x32xf32>
    %c0_5 = arith.constant 0 : index
    %c0_6 = arith.constant 0 : index
    %8 = vector.load %arg7[%c0_5, %c0_6] : memref<16x16xf32, #tpu.memory_space<vmem>>, vector<16x16xf32>
    %c0_7 = arith.constant 0 : index
    %c0_8 = arith.constant 0 : index
    %9 = vector.load %arg6[%c0_7, %c0_8] : memref<8x32xf32, #tpu.memory_space<vmem>>, vector<8x32xf32>
    %10 = vector.extract_strided_slice %9 {offsets = [0, 0], sizes = [1, 32], strides = [1, 1]} : vector<8x32xf32> to vector<1x32xf32>
    %11 = vector.extract_strided_slice %9 {offsets = [1, 0], sizes = [1, 32], strides = [1, 1]} : vector<8x32xf32> to vector<1x32xf32>
    %12 = vector.extract_strided_slice %9 {offsets = [2, 0], sizes = [1, 32], strides = [1, 1]} : vector<8x32xf32> to vector<1x32xf32>
    %13 = vector.extract_strided_slice %9 {offsets = [3, 0], sizes = [1, 32], strides = [1, 1]} : vector<8x32xf32> to vector<1x32xf32>
    %14 = vector.extract_strided_slice %9 {offsets = [4, 0], sizes = [1, 32], strides = [1, 1]} : vector<8x32xf32> to vector<1x32xf32>
    %15 = vector.extract_strided_slice %9 {offsets = [5, 0], sizes = [1, 32], strides = [1, 1]} : vector<8x32xf32> to vector<1x32xf32>
    %16 = vector.extract_strided_slice %9 {offsets = [6, 0], sizes = [1, 32], strides = [1, 1]} : vector<8x32xf32> to vector<1x32xf32>
    %17 = vector.extract_strided_slice %9 {offsets = [7, 0], sizes = [1, 32], strides = [1, 1]} : vector<8x32xf32> to vector<1x32xf32>
    %cst_9 = arith.constant 0.000000e+00 : f32
    %18 = vector.broadcast %cst_9 : f32 to vector<16x32xf32>
    %19 = vector.extract_strided_slice %6 {offsets = [0, 0], sizes = [16, 8], strides = [1, 1]} : vector<16x32xf32> to vector<16x8xf32>
    %20 = vector.extract_strided_slice %7 {offsets = [0, 0], sizes = [16, 8], strides = [1, 1]} : vector<16x32xf32> to vector<16x8xf32>
    %21 = vector.extract_strided_slice %5 {offsets = [0, 64], sizes = [16, 32], strides = [1, 1]} : vector<16x192xf32> to vector<16x32xf32>
    %cst_10 = arith.constant dense<0.000000e+00> : vector<16x16xf32>
    %22 = tpu.matmul %19, %20, %cst_10 {dimension_numbers = #tpu.dot_dimension_numbers<[1], [1], [0], [0], [0, 0, 1, 0], [], []>} : vector<16x8xf32>, vector<16x8xf32>, vector<16x16xf32> -> vector<16x16xf32>
    %cst_11 = arith.constant 0.353553385 : f32
    %23 = vector.broadcast %cst_11 : f32 to vector<16x16xf32>
    %24 = arith.mulf %22, %23 : vector<16x16xf32>
    %25 = arith.addf %24, %8 : vector<16x16xf32>
    %cst_12 = arith.constant dense<0xFF800000> : vector<16xf32>
    %26 = vector.multi_reduction <maximumf>, %25, %cst_12 [1] : vector<16x16xf32> to vector<16xf32>
    %27 = vector.shape_cast %26 : vector<16xf32> to vector<16x1xf32>
    %28 = vector.broadcast %27 : vector<16x1xf32> to vector<16x16xf32>
    %29 = arith.subf %25, %28 : vector<16x16xf32>
    %30 = math.exp %29 : vector<16x16xf32>
    %cst_13 = arith.constant dense<0.000000e+00> : vector<16xf32>
    %31 = vector.multi_reduction <add>, %30, %cst_13 [1] : vector<16x16xf32> to vector<16xf32>
    %32 = vector.shape_cast %31 : vector<16xf32> to vector<16x1xf32>
    %33 = vector.broadcast %32 : vector<16x1xf32> to vector<16x16xf32>
    %34 = arith.divf %30, %33 : vector<16x16xf32>
    %cst_14 = arith.constant dense<0.000000e+00> : vector<16x32xf32>
    %35 = tpu.matmul %34, %21, %cst_14 {dimension_numbers = #tpu.dot_dimension_numbers<[1], [0], [0], [1], [0, 0, 1, 1], [], []>} : vector<16x16xf32>, vector<16x32xf32>, vector<16x32xf32> -> vector<16x32xf32>
    %36 = arith.addf %18, %35 : vector<16x32xf32>
    %37 = vector.extract_strided_slice %6 {offsets = [0, 8], sizes = [16, 8], strides = [1, 1]} : vector<16x32xf32> to vector<16x8xf32>
    %38 = vector.extract_strided_slice %7 {offsets = [0, 8], sizes = [16, 8], strides = [1, 1]} : vector<16x32xf32> to vector<16x8xf32>
    %39 = vector.extract_strided_slice %5 {offsets = [0, 96], sizes = [16, 32], strides = [1, 1]} : vector<16x192xf32> to vector<16x32xf32>
    %cst_15 = arith.constant dense<0.000000e+00> : vector<16x16xf32>
    %40 = tpu.matmul %37, %38, %cst_15 {dimension_numbers = #tpu.dot_dimension_numbers<[1], [1], [0], [0], [0, 0, 1, 0], [], []>} : vector<16x8xf32>, vector<16x8xf32>, vector<16x16xf32> -> vector<16x16xf32>
    %cst_16 = arith.constant 0.353553385 : f32
    %41 = vector.broadcast %cst_16 : f32 to vector<16x16xf32>
    %42 = arith.mulf %40, %41 : vector<16x16xf32>
    %43 = arith.addf %42, %8 : vector<16x16xf32>
    %cst_17 = arith.constant dense<0xFF800000> : vector<16xf32>
    %44 = vector.multi_reduction <maximumf>, %43, %cst_17 [1] : vector<16x16xf32> to vector<16xf32>
    %45 = vector.shape_cast %44 : vector<16xf32> to vector<16x1xf32>
    %46 = vector.broadcast %45 : vector<16x1xf32> to vector<16x16xf32>
    %47 = arith.subf %43, %46 : vector<16x16xf32>
    %48 = math.exp %47 : vector<16x16xf32>
    %cst_18 = arith.constant dense<0.000000e+00> : vector<16xf32>
    %49 = vector.multi_reduction <add>, %48, %cst_18 [1] : vector<16x16xf32> to vector<16xf32>
    %50 = vector.shape_cast %49 : vector<16xf32> to vector<16x1xf32>
    %51 = vector.broadcast %50 : vector<16x1xf32> to vector<16x16xf32>
    %52 = arith.divf %48, %51 : vector<16x16xf32>
    %cst_19 = arith.constant dense<0.000000e+00> : vector<16x32xf32>
    %53 = tpu.matmul %52, %39, %cst_19 {dimension_numbers = #tpu.dot_dimension_numbers<[1], [0], [0], [1], [0, 0, 1, 1], [], []>} : vector<16x16xf32>, vector<16x32xf32>, vector<16x32xf32> -> vector<16x32xf32>
    %54 = arith.addf %36, %53 : vector<16x32xf32>
    %55 = vector.extract_strided_slice %6 {offsets = [0, 16], sizes = [16, 8], strides = [1, 1]} : vector<16x32xf32> to vector<16x8xf32>
    %56 = vector.extract_strided_slice %7 {offsets = [0, 16], sizes = [16, 8], strides = [1, 1]} : vector<16x32xf32> to vector<16x8xf32>
    %57 = vector.extract_strided_slice %5 {offsets = [0, 128], sizes = [16, 32], strides = [1, 1]} : vector<16x192xf32> to vector<16x32xf32>
    %cst_20 = arith.constant dense<0.000000e+00> : vector<16x16xf32>
    %58 = tpu.matmul %55, %56, %cst_20 {dimension_numbers = #tpu.dot_dimension_numbers<[1], [1], [0], [0], [0, 0, 1, 0], [], []>} : vector<16x8xf32>, vector<16x8xf32>, vector<16x16xf32> -> vector<16x16xf32>
    %cst_21 = arith.constant 0.353553385 : f32
    %59 = vector.broadcast %cst_21 : f32 to vector<16x16xf32>
    %60 = arith.mulf %58, %59 : vector<16x16xf32>
    %61 = arith.addf %60, %8 : vector<16x16xf32>
    %cst_22 = arith.constant dense<0xFF800000> : vector<16xf32>
    %62 = vector.multi_reduction <maximumf>, %61, %cst_22 [1] : vector<16x16xf32> to vector<16xf32>
    %63 = vector.shape_cast %62 : vector<16xf32> to vector<16x1xf32>
    %64 = vector.broadcast %63 : vector<16x1xf32> to vector<16x16xf32>
    %65 = arith.subf %61, %64 : vector<16x16xf32>
    %66 = math.exp %65 : vector<16x16xf32>
    %cst_23 = arith.constant dense<0.000000e+00> : vector<16xf32>
    %67 = vector.multi_reduction <add>, %66, %cst_23 [1] : vector<16x16xf32> to vector<16xf32>
    %68 = vector.shape_cast %67 : vector<16xf32> to vector<16x1xf32>
    %69 = vector.broadcast %68 : vector<16x1xf32> to vector<16x16xf32>
    %70 = arith.divf %66, %69 : vector<16x16xf32>
    %cst_24 = arith.constant dense<0.000000e+00> : vector<16x32xf32>
    %71 = tpu.matmul %70, %57, %cst_24 {dimension_numbers = #tpu.dot_dimension_numbers<[1], [0], [0], [1], [0, 0, 1, 1], [], []>} : vector<16x16xf32>, vector<16x32xf32>, vector<16x32xf32> -> vector<16x32xf32>
    %72 = arith.addf %54, %71 : vector<16x32xf32>
    %73 = vector.extract_strided_slice %6 {offsets = [0, 24], sizes = [16, 8], strides = [1, 1]} : vector<16x32xf32> to vector<16x8xf32>
    %74 = vector.extract_strided_slice %7 {offsets = [0, 24], sizes = [16, 8], strides = [1, 1]} : vector<16x32xf32> to vector<16x8xf32>
    %75 = vector.extract_strided_slice %5 {offsets = [0, 160], sizes = [16, 32], strides = [1, 1]} : vector<16x192xf32> to vector<16x32xf32>
    %cst_25 = arith.constant dense<0.000000e+00> : vector<16x16xf32>
    %76 = tpu.matmul %73, %74, %cst_25 {dimension_numbers = #tpu.dot_dimension_numbers<[1], [1], [0], [0], [0, 0, 1, 0], [], []>} : vector<16x8xf32>, vector<16x8xf32>, vector<16x16xf32> -> vector<16x16xf32>
    %cst_26 = arith.constant 0.353553385 : f32
    %77 = vector.broadcast %cst_26 : f32 to vector<16x16xf32>
    %78 = arith.mulf %76, %77 : vector<16x16xf32>
    %79 = arith.addf %78, %8 : vector<16x16xf32>
    %cst_27 = arith.constant dense<0xFF800000> : vector<16xf32>
    %80 = vector.multi_reduction <maximumf>, %79, %cst_27 [1] : vector<16x16xf32> to vector<16xf32>
    %81 = vector.shape_cast %80 : vector<16xf32> to vector<16x1xf32>
    %82 = vector.broadcast %81 : vector<16x1xf32> to vector<16x16xf32>
    %83 = arith.subf %79, %82 : vector<16x16xf32>
    %84 = math.exp %83 : vector<16x16xf32>
    %cst_28 = arith.constant dense<0.000000e+00> : vector<16xf32>
    %85 = vector.multi_reduction <add>, %84, %cst_28 [1] : vector<16x16xf32> to vector<16xf32>
    %86 = vector.shape_cast %85 : vector<16xf32> to vector<16x1xf32>
    %87 = vector.broadcast %86 : vector<16x1xf32> to vector<16x16xf32>
    %88 = arith.divf %84, %87 : vector<16x16xf32>
    %cst_29 = arith.constant dense<0.000000e+00> : vector<16x32xf32>
    %89 = tpu.matmul %88, %75, %cst_29 {dimension_numbers = #tpu.dot_dimension_numbers<[1], [0], [0], [1], [0, 0, 1, 1], [], []>} : vector<16x16xf32>, vector<16x32xf32>, vector<16x32xf32> -> vector<16x32xf32>
    %90 = arith.addf %72, %89 : vector<16x32xf32>
    %91 = vector.broadcast %10 : vector<1x32xf32> to vector<16x32xf32>
    %92 = arith.addf %90, %91 : vector<16x32xf32>
    %93 = arith.addf %0, %92 : vector<16x32xf32>
    %cst_30 = arith.constant dense<0.000000e+00> : vector<16xf32>
    %94 = vector.multi_reduction <add>, %93, %cst_30 [1] : vector<16x32xf32> to vector<16xf32>
    %95 = vector.shape_cast %94 : vector<16xf32> to vector<16x1xf32>
    %cst_31 = arith.constant 3.200000e+01 : f32
    %96 = vector.broadcast %cst_31 : f32 to vector<16x1xf32>
    %97 = arith.divf %95, %96 : vector<16x1xf32>
    %98 = vector.broadcast %97 : vector<16x1xf32> to vector<16x32xf32>
    %99 = arith.subf %93, %98 : vector<16x32xf32>
    %100 = arith.mulf %99, %99 : vector<16x32xf32>
    %cst_32 = arith.constant dense<0.000000e+00> : vector<16xf32>
    %101 = vector.multi_reduction <add>, %100, %cst_32 [1] : vector<16x32xf32> to vector<16xf32>
    %102 = vector.shape_cast %101 : vector<16xf32> to vector<16x1xf32>
    %cst_33 = arith.constant 3.200000e+01 : f32
    %103 = vector.broadcast %cst_33 : f32 to vector<16x1xf32>
    %104 = arith.divf %102, %103 : vector<16x1xf32>
    %105 = vector.broadcast %97 : vector<16x1xf32> to vector<16x32xf32>
    %106 = arith.subf %93, %105 : vector<16x32xf32>
    %cst_34 = arith.constant 9.99999974E-6 : f32
    %107 = vector.broadcast %cst_34 : f32 to vector<16x1xf32>
    %108 = arith.addf %104, %107 : vector<16x1xf32>
    %109 = math.rsqrt %108 : vector<16x1xf32>
    %110 = vector.broadcast %109 : vector<16x1xf32> to vector<16x32xf32>
    %111 = arith.mulf %106, %110 : vector<16x32xf32>
    %112 = vector.broadcast %12 : vector<1x32xf32> to vector<16x32xf32>
    %113 = arith.mulf %111, %112 : vector<16x32xf32>
    %114 = vector.broadcast %13 : vector<1x32xf32> to vector<16x32xf32>
    %115 = arith.addf %113, %114 : vector<16x32xf32>
    %c0_35 = arith.constant 0 : index
    %c0_36 = arith.constant 0 : index
    %116 = vector.load %arg3[%c0_35, %c0_36] : memref<32x64xf32, #tpu.memory_space<vmem>>, vector<32x64xf32>
    %cst_37 = arith.constant dense<0.000000e+00> : vector<16x64xf32>
    %117 = tpu.matmul %115, %116, %cst_37 {dimension_numbers = #tpu.dot_dimension_numbers<[1], [0], [0], [1], [0, 0, 1, 1], [], []>} : vector<16x32xf32>, vector<32x64xf32>, vector<16x64xf32> -> vector<16x64xf32>
    %c0_38 = arith.constant 0 : index
    %c0_39 = arith.constant 0 : index
    %118 = vector.load %arg4[%c0_38, %c0_39] : memref<1x64xf32, #tpu.memory_space<vmem>>, vector<1x64xf32>
    %119 = vector.broadcast %118 : vector<1x64xf32> to vector<16x64xf32>
    %120 = arith.addf %117, %119 : vector<16x64xf32>
    %cst_40 = arith.constant 0.000000e+00 : f32
    %121 = vector.broadcast %cst_40 : f32 to vector<16x64xf32>
    %122 = arith.maximumf %120, %121 : vector<16x64xf32>
    %c0_41 = arith.constant 0 : index
    %c0_42 = arith.constant 0 : index
    %123 = vector.load %arg5[%c0_41, %c0_42] : memref<64x32xf32, #tpu.memory_space<vmem>>, vector<64x32xf32>
    %cst_43 = arith.constant dense<0.000000e+00> : vector<16x32xf32>
    %124 = tpu.matmul %122, %123, %cst_43 {dimension_numbers = #tpu.dot_dimension_numbers<[1], [0], [0], [1], [0, 0, 1, 1], [], []>} : vector<16x64xf32>, vector<64x32xf32>, vector<16x32xf32> -> vector<16x32xf32>
    %125 = vector.broadcast %11 : vector<1x32xf32> to vector<16x32xf32>
    %126 = arith.addf %124, %125 : vector<16x32xf32>
    %127 = arith.addf %115, %126 : vector<16x32xf32>
    %cst_44 = arith.constant dense<0.000000e+00> : vector<16xf32>
    %128 = vector.multi_reduction <add>, %127, %cst_44 [1] : vector<16x32xf32> to vector<16xf32>
    %129 = vector.shape_cast %128 : vector<16xf32> to vector<16x1xf32>
    %cst_45 = arith.constant 3.200000e+01 : f32
    %130 = vector.broadcast %cst_45 : f32 to vector<16x1xf32>
    %131 = arith.divf %129, %130 : vector<16x1xf32>
    %132 = vector.broadcast %131 : vector<16x1xf32> to vector<16x32xf32>
    %133 = arith.subf %127, %132 : vector<16x32xf32>
    %134 = arith.mulf %133, %133 : vector<16x32xf32>
    %cst_46 = arith.constant dense<0.000000e+00> : vector<16xf32>
    %135 = vector.multi_reduction <add>, %134, %cst_46 [1] : vector<16x32xf32> to vector<16xf32>
    %136 = vector.shape_cast %135 : vector<16xf32> to vector<16x1xf32>
    %cst_47 = arith.constant 3.200000e+01 : f32
    %137 = vector.broadcast %cst_47 : f32 to vector<16x1xf32>
    %138 = arith.divf %136, %137 : vector<16x1xf32>
    %139 = vector.broadcast %131 : vector<16x1xf32> to vector<16x32xf32>
    %140 = arith.subf %127, %139 : vector<16x32xf32>
    %cst_48 = arith.constant 9.99999974E-6 : f32
    %141 = vector.broadcast %cst_48 : f32 to vector<16x1xf32>
    %142 = arith.addf %138, %141 : vector<16x1xf32>
    %143 = math.rsqrt %142 : vector<16x1xf32>
    %144 = vector.broadcast %143 : vector<16x1xf32> to vector<16x32xf32>
    %145 = arith.mulf %140, %144 : vector<16x32xf32>
    %146 = vector.broadcast %14 : vector<1x32xf32> to vector<16x32xf32>
    %147 = arith.mulf %145, %146 : vector<16x32xf32>
    %148 = vector.broadcast %15 : vector<1x32xf32> to vector<16x32xf32>
    %149 = arith.addf %147, %148 : vector<16x32xf32>
    %cst_49 = arith.constant dense<0.000000e+00> : vector<16xf32>
    %150 = vector.multi_reduction <add>, %149, %cst_49 [1] : vector<16x32xf32> to vector<16xf32>
    %151 = vector.shape_cast %150 : vector<16xf32> to vector<16x1xf32>
    %cst_50 = arith.constant 3.200000e+01 : f32
    %152 = vector.broadcast %cst_50 : f32 to vector<16x1xf32>
    %153 = arith.divf %151, %152 : vector<16x1xf32>
    %154 = vector.broadcast %153 : vector<16x1xf32> to vector<16x32xf32>
    %155 = arith.subf %149, %154 : vector<16x32xf32>
    %156 = arith.mulf %155, %155 : vector<16x32xf32>
    %cst_51 = arith.constant dense<0.000000e+00> : vector<16xf32>
    %157 = vector.multi_reduction <add>, %156, %cst_51 [1] : vector<16x32xf32> to vector<16xf32>
    %158 = vector.shape_cast %157 : vector<16xf32> to vector<16x1xf32>
    %cst_52 = arith.constant 3.200000e+01 : f32
    %159 = vector.broadcast %cst_52 : f32 to vector<16x1xf32>
    %160 = arith.divf %158, %159 : vector<16x1xf32>
    %161 = vector.broadcast %153 : vector<16x1xf32> to vector<16x32xf32>
    %162 = arith.subf %149, %161 : vector<16x32xf32>
    %cst_53 = arith.constant 9.99999974E-6 : f32
    %163 = vector.broadcast %cst_53 : f32 to vector<16x1xf32>
    %164 = arith.addf %160, %163 : vector<16x1xf32>
    %165 = math.rsqrt %164 : vector<16x1xf32>
    %166 = vector.broadcast %165 : vector<16x1xf32> to vector<16x32xf32>
    %167 = arith.mulf %162, %166 : vector<16x32xf32>
    %168 = vector.broadcast %16 : vector<1x32xf32> to vector<16x32xf32>
    %169 = arith.mulf %167, %168 : vector<16x32xf32>
    %170 = vector.broadcast %17 : vector<1x32xf32> to vector<16x32xf32>
    %171 = arith.addf %169, %170 : vector<16x32xf32>
    %c0_54 = arith.constant 0 : index
    %c0_55 = arith.constant 0 : index
    %172 = vector.load %arg8[%c0_54, %c0_55] : memref<16x32xf32, #tpu.memory_space<vmem>>, vector<16x32xf32>
    tpu.vector_store %arg8[%c0_54, %c0_55], %171 {strides = array<i32>} : memref<16x32xf32, #tpu.memory_space<vmem>>, vector<16x32xf32>,
    return
  }
}

</mosaic_0001>

<bundles_post_ra>
// kernel: transformer_encoder.1
= control target key start
LH: loop header
LB: loop body
LE: loop exit
PB: predicated region body
PF: predicated region fallthrough
CT: control target
= control target key end

     0   :  { %13 = vsyncpa [#allocation3], 0  ;;  %s1538_s0 = inlined_call_operand.hbm [shape: f32[16,32], index: 0, kind: input, shape index: {}]   ;;  %s1539_s1 = inlined_call_operand.vmem [shape: f32[32,192], index: 1, kind: input, shape index: {}]   ;;  %s1540_s2 = inlined_call_operand.hbm [shape: f32[1,192], index: 2, kind: input, shape index: {}]   ;;  %s1541_s3 = inlined_call_operand.vmem [shape: f32[32,64], index: 3, kind: input, shape index: {}]   ;;  %s1542_s4 = inlined_call_operand.vmem [shape: f32[1,64], index: 4, kind: input, shape index: {}]   ;;  %s1543_s5 = inlined_call_operand.vmem [shape: f32[64,32], index: 5, kind: input, shape index: {}]   ;;  %s1544_s6 = inlined_call_operand.hbm [shape: f32[8,32], index: 6, kind: input, shape index: {}]   ;;  %s1545_s7 = inlined_call_operand.hbm [shape: f32[16,16], index: 7, kind: input, shape index: {}]   ;;  %s1546_s8 = inlined_call_operand.hbm [shape: f32[16,32], index: 8, kind: output, shape index: {}]  }
   0x1   :  { %14 = vsyncpa [#allocation6], 0 }
   0x2   :  { %15 = vsyncpa [#allocation9], 0  ;;  %s37_s29 = sshll.u32 %s1540_s2, 4  ;;  %s38_s29 = int_to_ptr.hbm [resolvable:$true] %s37_s29 }
   0x3   :  { %16 = vsyncpa [#allocation4], 0  ;;  %s1169_s30 = smov [#allocation5]   ;;  %s21_s12 = sshll.u32 %s1538_s0, 4  ;;  %s22_s12 = int_to_ptr.hbm [resolvable:$true] %s21_s12 }
   0x4   :  { %s39_s9 = sshll.u32 %s1169_s30, 4  ;;  %s1170_s13 = smov [#allocation2]   ;;  %s40_s9 = int_to_ptr.vmem [resolvable:$true] %s39_s9 }
   0x5   :  { %42 = dma.hbm_to_vmem [thread:$0]  %s38_s29, 32, %s40_s9, [#allocation6]  }
   0x6   :  { %s23_s14 = sshll.u32 %s1170_s13, 4  ;;  %s1171_s15 = smov 128   ;;  %s24_s14 = int_to_ptr.vmem [resolvable:$true] %s23_s14 }
   0x7   :  { %s1172_s16 = smov 8   ;;  %s54_s18 = sshll.u32 %s1544_s6, 4  ;;  %s55_s18 = int_to_ptr.hbm [resolvable:$true] %s54_s18 }
   0x8   :  { %29 = dma.hbm_to_vmem [thread:$0]  %s22_s12, 256, %s24_s14, [#allocation3], %s1171_s15, %s1171_s15, %s1172_s16  }
   0x9   :  { %s1173_s19 = smov [#allocation7]   ;;  %s64_s22 = sshll.u32 %s1545_s7, 4  ;;  %s65_s22 = int_to_ptr.hbm [resolvable:$true] %s64_s22 }
   0xa   :  { %s56_s20 = sshll.u32 %s1173_s19, 4  ;;  %s1174_s23 = smov [#allocation8]   ;;  %s57_s20 = int_to_ptr.vmem [resolvable:$true] %s56_s20 }
   0xb   :  { %59 = dma.hbm_to_vmem [thread:$0]  %s55_s18, 128, %s57_s20, [#allocation6]  }
   0xc   :  { %s66_s24 = sshll.u32 %s1174_s23, 4  ;;  %s67_s24 = int_to_ptr.vmem [resolvable:$true] %s66_s24 }
   0xd   :  { %72 = dma.hbm_to_vmem [thread:$0]  %s65_s22, 256, %s67_s24, [#allocation9], %s1171_s15, %s1171_s15, %s1172_s16  }
   0xe   :  { %1161 = dma.done.wait [#allocation3], 256  }
   0xf   :  { %1162 = vsyncadd [#allocation3], 4294967040 }
  0x10   :  { %1163 = dma.done.wait [#allocation6], 160  }
  0x11   :  { %1164 = vsyncadd [#allocation6], 4294967136 }
  0x12   :  { %1165 = dma.done.wait [#allocation9], 256  }
  0x13   :  { %1166 = vsyncadd [#allocation9], 4294967040  ;;  %v97_v0 = vld [vmem:[%s1539_s1 + $0x30] sm:$0xff]  ;;  %v95_v1 = vld [vmem:[%s1539_s1 + $0x20] sm:$0xff]  ;;  %vm105_vm0 = vcmask 261120   ;;  %s1175_s9 = smov 96  }
  0x14   :  { %124 = vmatpush.msra.mxu0 %v97_v0  ;;  %v93_v2 = vld [vmem:[%s1539_s1 + $0x10] sm:$0xff]  ;;  %v91_v3 = vld [vmem:[%s1539_s1] sm:$0xff]  ;;  %v1265_v5 = vld [vmem:[#allocation2 + $0x8] sm:$0xff]  ;;  %s1176_s10 = smov 120   ;;  %s1177_s11 = smov 88   ;;  %vm167_vm1 = vcmask 64512  }
  0x15   :  { %v1261_v4 = vld [vmem:[#allocation2] sm:$0xff]  ;;  %v1269_v6 = vld [vmem:[#allocation5] sm:$0x3]  ;;  %vm203_vm2 = vcmask 130048   ;;  %s1178_s12 = smov 80   ;;  %s1179_s13 = smov 32  }
  0x16   :  { %125 = vmatpush.msra.mxu0 %v95_v1  ;;  %v101_v7 = vperm.slane %v1269_v6, 0  ;;  %v1294_v19 = vld [vmem:[#allocation8] sm:$0xff]  ;;  %v1298_v24 = vld [vmem:[#allocation8 + $0x8] sm:$0xff]  ;;  %s1180_s14 = smov 72   ;;  %s1181_s2 = smov 104  }
  0x17   :  { %s1182_s17 = smov 112   ;;  %s915_s7 = sshll.u32 %s1546_s8, 4  ;;  %s916_s7 = int_to_ptr.hbm [resolvable:$true] %s915_s7 }
  0x18   :  { %126 = vmatpush.msra.mxu0 %v93_v2 }
  0x1a   :  { %127 = vmatpush.msra.mxu0 %v91_v3 }
  0x1b   :  { %930 = vmatmul.msk.f32.vlgmr.msra.gmra.mxu0 %vm105_vm0, %v1261_v4 }
  0x23   :  { %931 = vmatmul.msk.f32.gmra.mxu0 %vm105_vm0, %v1265_v5 }
  0x98   :  { %v129_v8 = vpop.f32.mrf.mxu0 }
  0x99   :  { %v1272_v9 = vadd.f32 %v129_v8, %v101_v7 }
  0x9b   :  { %163 = vrot.lane.b32.xlu2 %v1272_v9, %s1175_s9  ;;  %252 = vrot.lane.b32.xlu1 %v1272_v9, %s1176_s10 }
  0xa0   :  { %v132_v10 = vpop.f32.mrf.mxu0 }
  0xa1   :  { %v1277_v11 = vadd.f32 %v132_v10, %v101_v7 }
  0xa3   :  { %258 = vrot.lane.b32.xlu0 %v1277_v11, %s1177_s11  ;;  %254 = vrot.lane.b32.xlu1 %v1277_v11, %s1176_s10  ;;  %v1305_v28 = vpack.i.bf16 %v1272_v9, %v1277_v11 }
  0xab   :  { %256 = vrot.lane.b32.xlu0 %v1272_v9, %s1177_s11 }
  0xb3   :  { %165 = vrot.lane.b32.xlu0 %v1277_v11, %s1175_s9 }
  0xf5   :  { %v164_v17 = vpop.permute.xlu2 %163 }
 0x10d   :  { %v253_v14 = vpop.permute.xlu1 %252 }
 0x115   :  { %v259_v12 = vpop.permute.xlu0 %258  ;;  %v255_v16 = vpop.permute.xlu1 %254 }
 0x116   :  { %938 = vmatpush.xpose.msk.msra.mxu3 %vm167_vm1, %v259_v12 }
 0x11d   :  { %v257_v13 = vpop.permute.xlu0 %256 }
 0x11e   :  { %939 = vmatpush.xpose.msk.msra.mxu3 %vm167_vm1, %v257_v13 }
 0x121   :  { %940 = vmatmul.msk.f32.vlgmr.msra.gmra.mxu3 %vm167_vm1, %v253_v14 }
 0x125   :  { %v166_v15 = vpop.permute.xlu0 %165 }
 0x126   :  { %934 = vmatpush.xpose.msk.msra.mxu2 %vm167_vm1, %v166_v15 }
 0x129   :  { %941 = vmatmul.msk.f32.gmra.mxu3 %vm167_vm1, %v255_v16 }
 0x12a   :  { %935 = vmatpush.xpose.msk.msra.mxu2 %vm167_vm1, %v164_v17 }
 0x12d   :  { %936 = vmatmul.msk.f32.vlgmr.msra.gmra.mxu2 %vm167_vm1, %v1272_v9 }
 0x135   :  { %937 = vmatmul.msk.f32.gmra.mxu2 %vm167_vm1, %v1277_v11 }
 0x1a4   :  { %v285_v18 = vpop.f32.mrf.mxu3 }
 0x1a5   :  { %v291_v20 = vmul.f32 0.35355338, %v285_v18 }
 0x1a7   :  { %v293_v21 = vadd.f32 %v291_v20, %v1294_v19 }
 0x1a9   :  { %v295_v22 = vsel %vm203_vm2, %v293_v21, -inf }
 0x1aa   :  { %296 = vmax.xlane.f32.xlu2 %v295_v22 }
 0x1ac   :  { %v288_v23 = vpop.f32.mrf.mxu3 }
 0x1ad   :  { %v292_v25 = vmul.f32 0.35355338, %v288_v23  ;;  %v98_v23 = vld [vmem:[%s1539_s1 + $0x38] sm:$0xff] }
 0x1ae   :  { %147 = vmatpush.msra.mxu1 %v98_v23 }
 0x1af   :  { %v294_v26 = vadd.f32 %v292_v25, %v1298_v24  ;;  %v96_v25 = vld [vmem:[%s1539_s1 + $0x28] sm:$0xff] }
 0x1b0   :  { %v193_v29 = vpop.f32.mrf.mxu2  ;;  %148 = vmatpush.msra.mxu1 %v96_v25 }
 0x1b1   :  { %v298_v27 = vsel %vm203_vm2, %v294_v26, -inf  ;;  %v199_v51 = vmul.f32 0.35355338, %v193_v29 }
 0x1b2   :  { %299 = vmax.xlane.f32.xlu2 %v298_v27  ;;  %v92_v27 = vld [vmem:[%s1539_s1 + $0x8] sm:$0xff] }
 0x1b3   :  { %v1329_v52 = vadd.f32 %v199_v51, %v1294_v19 }
 0x1b5   :  { %v204_v53 = vsel %vm203_vm2, %v1329_v52, -inf }
 0x1b8   :  { %v196_v30 = vpop.f32.mrf.mxu2 }
 0x1b9   :  { %v200_v31 = vmul.f32 0.35355338, %v196_v30 }
 0x1bb   :  { %v1314_v32 = vadd.f32 %v200_v31, %v1298_v24 }
 0x1bd   :  { %v207_v33 = vsel %vm203_vm2, %v1314_v32, -inf }
 0x1ca   :  { %419 = vrot.lane.b32.xlu2 %v1277_v11, %s1178_s12 }
 0x1d2   :  { %980 = vrot.lane.b32.xlu2 %v1305_v28, %s1179_s13 }
 0x1da   :  { %417 = vrot.lane.b32.xlu2 %v1272_v9, %s1178_s12 }
 0x1e2   :  { %541 = vrot.lane.b32.xlu2 %v1277_v11, %s1180_s14 }
 0x1ea   :  { %539 = vrot.lane.b32.xlu2 %v1272_v9, %s1180_s14 }
 0x1f2   :  { %535 = vrot.lane.b32.xlu2 %v1272_v9, %s1181_s2 }
 0x21b   :  { %208 = vmax.xlane.f32.xlu2 %v207_v33 }
 0x21d   :  { %v297_v34 = vpop.xlane.xlu2 %296 }
 0x21e   :  { %v301_v35 = vsub.f32 %v293_v21, %v297_v34 }
 0x220   :  { %v303_v36 = vmul.f32 1.442695, %v301_v35 }
 0x222   :  { %995 = vpow2.f32 %v303_v36 }
 0x225   :  { %v300_v37 = vpop.xlane.xlu2 %299 }
 0x226   :  { %v302_v38 = vsub.f32 %v294_v26, %v300_v37  ;;  %v94_v26 = vld [vmem:[%s1539_s1 + $0x18] sm:$0xff]  ;;  %s1183_s1 = smov 64  }
 0x227   :  { %149 = vmatpush.msra.mxu1 %v94_v26 }
 0x228   :  { %v996_v39 = vpop.eup %995  ;;  %v305_v40 = vmul.f32 1.442695, %v302_v38 }
 0x229   :  { %v307_v41 = vsel %vm203_vm2, %v996_v39, 0.0  ;;  %150 = vmatpush.msra.mxu1 %v92_v27 }
 0x22a   :  { %997 = vpow2.f32 %v305_v40  ;;  %308 = vadd.xlane.f32.xlu1 %v307_v41  ;;  %932 = vmatmul.msk.f32.vlgmr.msra.gmra.mxu1 %vm105_vm0, %v1261_v4 }
 0x22d   :  { %v420_v42 = vpop.permute.xlu2 %419 }
 0x22e   :  { %946 = vmatpush.xpose.msk.msrb.mxu2 %vm167_vm1, %v420_v42 }
 0x230   :  { %v998_v43 = vpop.eup %997 }
 0x231   :  { %v310_v44 = vsel %vm203_vm2, %v998_v43, 0.0 }
 0x232   :  { %311 = vadd.xlane.f32.xlu0 %v310_v44  ;;  %933 = vmatmul.msk.f32.gmra.mxu1 %vm105_vm0, %v1265_v5 }
 0x235   :  { %v981_v45 = vpop.permute.xlu2 %980 }
 0x236   :  { %v982_v46 = vunpack.i.l.bf16 %v981_v45  ;;  %v983_v47 = vunpack.i.h.bf16 %v981_v45 }
 0x238   :  { %369 = vmatpush.msrb.mxu0 %v982_v46 }
 0x23a   :  { %370 = vmatpush.msrb.mxu0 %v983_v47 }
 0x23d   :  { %v418_v48 = vpop.permute.xlu2 %417 }
 0x23e   :  { %947 = vmatpush.xpose.msk.msrb.mxu2 %vm167_vm1, %v418_v48 }
 0x243   :  { %413 = vrot.lane.b32.xlu1 %v1272_v9, %s1182_s17 }
 0x245   :  { %v542_v49 = vpop.permute.xlu2 %541 }
 0x246   :  { %415 = vrot.lane.b32.xlu0 %v1277_v11, %s1182_s17  ;;  %952 = vmatpush.xpose.msk.msra.mxu0 %vm167_vm1, %v542_v49 }
 0x24b   :  { %537 = vrot.lane.b32.xlu1 %v1277_v11, %s1181_s2 }
 0x24d   :  { %v540_v50 = vpop.permute.xlu2 %539 }
 0x24e   :  { %953 = vmatpush.xpose.msk.msra.mxu0 %vm167_vm1, %v540_v50 }
 0x255   :  { %v536_v20 = vpop.permute.xlu2 %535 }
 0x270   :  { %205 = vmax.xlane.f32.xlu0 %v204_v53 }
 0x28e   :  { %v209_v30 = vpop.xlane.xlu2 %208 }
 0x28f   :  { %v211_v33 = vsub.f32 %v1314_v32, %v209_v30 }
 0x291   :  { %v214_v38 = vmul.f32 1.442695, %v211_v33 }
 0x29d   :  { %v309_v54 = vpop.xlane.xlu1 %308 }
 0x29e   :  { %999 = vrcp.f32 %v309_v54  ;;  %v324_v59 = vand.u32 2147483648, %v309_v54  ;;  %v322_v61 = vand.u32 2147483647, %v309_v54  ;;  %vm318_vm4 = vweird.f32 %v309_v54 }
 0x2a0   :  { %v325_v0 = vor.u32 1.1754944e-38, %v324_v59  ;;  %vm323_vm6 = vcmp.eq.f32.partialorder %v322_v61, 8.507059e+37 }
 0x2a4   :  { %v1000_v55 = vpop.eup %999 }
 0x2a5   :  { %v314_v56 = vmul.f32 %v1000_v55, %v309_v54  ;;  %v312_v57 = vpop.xlane.xlu0 %311  ;;  %vm319_vm3 = vweird.f32 %v1000_v55 }
 0x2a6   :  { %1001 = vrcp.f32 %v312_v57  ;;  %vm320_vm5 = vmor %vm318_vm4, %vm319_vm3  ;;  %v339_v9 = vand.u32 2147483648, %v312_v57  ;;  %v337_v11 = vand.u32 2147483647, %v312_v57  ;;  %vm333_vm8 = vweird.f32 %v312_v57 }
 0x2a7   :  { %v315_v58 = vsub.f32 1.0, %v314_v56  ;;  %1003 = vpow2.f32 %v214_v38 }
 0x2a8   :  { %v340_v13 = vor.u32 1.1754944e-38, %v339_v9  ;;  %vm338_vm10 = vcmp.eq.f32.partialorder %v337_v11, 8.507059e+37 }
 0x2a9   :  { %v316_v60 = vmul.f32 %v1000_v55, %v315_v58 }
 0x2ab   :  { %v317_v62 = vadd.f32 %v1000_v55, %v316_v60 }
 0x2ac   :  { %v1002_v63 = vpop.eup %1001 }
 0x2ad   :  { %v329_v1 = vmul.f32 %v1002_v63, %v312_v57  ;;  %v321_v2 = vsel %vm320_vm5, %v1000_v55, %v317_v62  ;;  %vm334_vm7 = vweird.f32 %v1002_v63  ;;  %v1367_v50 = vpop.eup %1003 }
 0x2ae   :  { %v326_v3 = vsel %vm323_vm6, %v325_v0, %v321_v2  ;;  %vm335_vm9 = vmor %vm333_vm8, %vm334_vm7 }
 0x2af   :  { %v330_v7 = vsub.f32 1.0, %v329_v1  ;;  %v327_v8 = vmul.f32 %v996_v39, %v326_v3  ;;  %v102_v1 = vperm.slane %v1269_v6, 1 }
 0x2b1   :  { %v331_v10 = vmul.f32 %v1002_v63, %v330_v7  ;;  %942 = vmatmul.msk.f32.vlgmr.msrb.gmra.mxu0 %vm203_vm2, %v327_v8 }
 0x2b3   :  { %v332_v12 = vadd.f32 %v1002_v63, %v331_v10 }
 0x2b5   :  { %v414_v14 = vpop.permute.xlu1 %413  ;;  %v336_v15 = vsel %vm335_vm9, %v1002_v63, %v332_v12 }
 0x2b6   :  { %948 = vmatmul.msk.f32.vlgmr.msrb.gmra.mxu2 %vm167_vm1, %v414_v14  ;;  %v341_v16 = vsel %vm338_vm10, %v340_v13, %v336_v15 }
 0x2b7   :  { %v342_v17 = vmul.f32 %v998_v43, %v341_v16 }
 0x2b8   :  { %v416_v18 = vpop.permute.xlu0 %415 }
 0x2b9   :  { %943 = vmatmul.msk.f32.gmra.mxu0 %vm203_vm2, %v342_v17 }
 0x2bd   :  { %v538_v21 = vpop.permute.xlu1 %537 }
 0x2be   :  { %949 = vmatmul.msk.f32.gmra.mxu2 %vm167_vm1, %v416_v18 }
 0x2c1   :  { %954 = vmatmul.msk.f32.vlgmr.msra.gmra.mxu0 %vm167_vm1, %v536_v20 }
 0x2c9   :  { %955 = vmatmul.msk.f32.gmra.mxu0 %vm167_vm1, %v538_v21 }
 0x2e3   :  { %v206_v34 = vpop.xlane.xlu0 %205 }
 0x2e4   :  { %v210_v37 = vsub.f32 %v1329_v52, %v206_v34 }
 0x2e6   :  { %v212_v42 = vmul.f32 1.442695, %v210_v37 }
 0x2e8   :  { %1005 = vpow2.f32 %v212_v42 }
 0x2ee   :  { %v1370_v52 = vpop.eup %1005 }
 0x2ef   :  { %v216_v54 = vsel %vm203_vm2, %v1370_v52, 0.0 }
 0x32e   :  { %v1339_v22 = vpop.f32.mrf.mxu0 }
 0x336   :  { %v1353_v29 = vpop.f32.mrf.mxu0 }
 0x339   :  { %v446_v31 = vpop.f32.mrf.mxu2 }
 0x33a   :  { %v452_v35 = vmul.f32 0.35355338, %v446_v31 }
 0x33c   :  { %v454_v36 = vadd.f32 %v452_v35, %v1294_v19 }
 0x33e   :  { %v568_v39 = vpop.f32.mrf.mxu0  ;;  %v456_v40 = vsel %vm203_vm2, %v454_v36, -inf }
 0x33f   :  { %v574_v41 = vmul.f32 0.35355338, %v568_v39  ;;  %457 = vmax.xlane.f32.xlu1 %v456_v40 }
 0x341   :  { %v449_v43 = vpop.f32.mrf.mxu2  ;;  %v576_v44 = vadd.f32 %v574_v41, %v1294_v19  ;;  %v219_v19 = vsel %vm203_vm2, %v1367_v50, 0.0 }
 0x342   :  { %v453_v32 = vmul.f32 0.35355338, %v449_v43 }
 0x343   :  { %v578_v45 = vsel %vm203_vm2, %v576_v44, -inf }
 0x344   :  { %579 = vmax.xlane.f32.xlu2 %v578_v45  ;;  %v455_v46 = vadd.f32 %v453_v32, %v1298_v24 }
 0x346   :  { %v571_v47 = vpop.f32.mrf.mxu0  ;;  %v459_v48 = vsel %vm203_vm2, %v455_v46, -inf }
 0x347   :  { %v575_v49 = vmul.f32 0.35355338, %v571_v47  ;;  %460 = vmax.xlane.f32.xlu0 %v459_v48 }
 0x349   :  { %v577_v51 = vadd.f32 %v575_v49, %v1298_v24  ;;  %v152_v24 = vpop.f32.mrf.mxu1 }
 0x34a   :  { %v153_v12 = vadd.f32 %v152_v24, %v102_v1 }
 0x34b   :  { %v581_v53 = vsel %vm203_vm2, %v577_v51, -inf }
 0x34c   :  { %220 = vadd.xlane.f32.xlu2 %v219_v19  ;;  %582 = vmax.xlane.f32.xlu1 %v581_v53 }
 0x34f   :  { %217 = vadd.xlane.f32.xlu0 %v216_v54 }
 0x351   :  { %v155_v8 = vpop.f32.mrf.mxu1 }
 0x352   :  { %v156_v9 = vadd.f32 %v155_v8, %v102_v1 }
 0x354   :  { %524 = vmatpush.msrb.mxu3 %v156_v9  ;;  %v989_v17 = vpack.i.bf16 %v153_v12, %v156_v9 }
 0x356   :  { %525 = vmatpush.msrb.mxu3 %v153_v12 }
 0x3b2   :  { %v458_v55 = vpop.xlane.xlu1 %457 }
 0x3b3   :  { %v462_v56 = vsub.f32 %v454_v36, %v458_v55 }
 0x3b5   :  { %v464_v57 = vmul.f32 1.442695, %v462_v56 }
 0x3b7   :  { %1007 = vpow2.f32 %v464_v57  ;;  %v580_v58 = vpop.xlane.xlu2 %579 }
 0x3b8   :  { %v584_v59 = vsub.f32 %v576_v44, %v580_v58 }
 0x3ba   :  { %v586_v60 = vmul.f32 1.442695, %v584_v59  ;;  %v461_v61 = vpop.xlane.xlu0 %460 }
 0x3bb   :  { %v463_v62 = vsub.f32 %v455_v46, %v461_v61 }
 0x3bc   :  { %1009 = vpow2.f32 %v586_v60 }
 0x3bd   :  { %v1377_v63 = vpop.eup %1007  ;;  %v466_v0 = vmul.f32 1.442695, %v463_v62 }
 0x3be   :  { %v468_v2 = vsel %vm203_vm2, %v1377_v63, 0.0 }
 0x3bf   :  { %1011 = vpow2.f32 %v466_v0  ;;  %469 = vadd.xlane.f32.xlu1 %v468_v2  ;;  %v583_v3 = vpop.xlane.xlu1 %582  ;;  %v1396_v21 = vpop.xlane.xlu2 %220 }
 0x3c0   :  { %v585_v7 = vsub.f32 %v577_v51, %v583_v3  ;;  %vm242_vm10 = vweird.f32 %v1396_v21 }
 0x3c2   :  { %v1382_v10 = vpop.eup %1009  ;;  %v588_v11 = vmul.f32 1.442695, %v585_v7  ;;  %v218_v18 = vpop.xlane.xlu0 %217 }
 0x3c3   :  { %v590_v13 = vsel %vm203_vm2, %v1382_v10, 0.0  ;;  %vm227_vm1 = vweird.f32 %v218_v18  ;;  %v233_v19 = vand.u32 2147483648, %v218_v18  ;;  %v231_v54 = vand.u32 2147483647, %v218_v18 }
 0x3c4   :  { %1013 = vpow2.f32 %v588_v11  ;;  %591 = vadd.xlane.f32.xlu2 %v590_v13  ;;  %v248_v13 = vand.u32 2147483648, %v1396_v21 }
 0x3c5   :  { %v1386_v14 = vpop.eup %1011  ;;  %1015 = vrcp.f32 %v218_v18  ;;  %v234_v61 = vor.u32 1.1754944e-38, %v233_v19  ;;  %vm232_vm7 = vcmp.eq.f32.partialorder %v231_v54, 8.507059e+37 }
 0x3c6   :  { %v471_v6 = vsel %vm203_vm2, %v1386_v14, 0.0 }
 0x3c7   :  { %472 = vadd.xlane.f32.xlu0 %v471_v6 }
 0x3ca   :  { %v1390_v15 = vpop.eup %1013 }
 0x3cb   :  { %v593_v16 = vsel %vm203_vm2, %v1390_v15, 0.0  ;;  %v1016_v23 = vpop.eup %1015 }
 0x3cc   :  { %v223_v25 = vmul.f32 %v1016_v23, %v218_v18  ;;  %vm228_vm15 = vweird.f32 %v1016_v23  ;;  %v246_v18 = vand.u32 2147483647, %v1396_v21 }
 0x3cd   :  { %vm1413_vm4 = vmor %vm227_vm1, %vm228_vm15 }
 0x3cf   :  { %594 = vadd.xlane.f32.xlu0 %v593_v16 }
 0x3d8   :  { %985 = vrot.lane.b32.xlu1 %v1305_v28, %s1183_s1  ;;  %v224_v28 = vsub.f32 1.0, %v223_v25 }
 0x3da   :  { %v225_v39 = vmul.f32 %v1016_v23, %v224_v28 }
 0x3dc   :  { %990 = vrot.lane.b32.xlu2 %v989_v17, %s1175_s9  ;;  %v226_v46 = vadd.f32 %v1016_v23, %v225_v39 }
 0x3de   :  { %v230_v60 = vsel %vm1413_vm4, %v1016_v23, %v226_v46 }
 0x3df   :  { %v235_v7 = vsel %vm232_vm7, %v234_v61, %v230_v60  ;;  %v1184_v60 = vmov 32.0  }
 0x3e0   :  { %v236_v17 = vmul.f32 %v1370_v52, %v235_v7 }
 0x432   :  { %v470_v20 = vpop.xlane.xlu1 %469 }
 0x433   :  { %1017 = vrcp.f32 %v470_v20  ;;  %v485_v35 = vand.u32 2147483648, %v470_v20  ;;  %v483_v37 = vand.u32 2147483647, %v470_v20  ;;  %vm479_vm12 = vweird.f32 %v470_v20 }
 0x434   :  { %1019 = vrcp.f32 %v1396_v21 }
 0x435   :  { %v486_v42 = vor.u32 1.1754944e-38, %v485_v35  ;;  %vm484_vm14 = vcmp.eq.f32.partialorder %v483_v37, 8.507059e+37 }
 0x437   :  { %v1401_v34 = vpop.xlane.xlu2 %591 }
 0x438   :  { %v605_v28 = vand.u32 2147483647, %v1401_v34 }
 0x439   :  { %v1018_v26 = vpop.eup %1017 }
 0x43a   :  { %v475_v27 = vmul.f32 %v1018_v26, %v470_v20  ;;  %v473_v30 = vpop.xlane.xlu0 %472  ;;  %v1399_v31 = vpop.eup %1019  ;;  %vm480_vm11 = vweird.f32 %v1018_v26  ;;  %vm606_vm1 = vcmp.eq.f32.partialorder %v605_v28, 8.507059e+37 }
 0x43b   :  { %1021 = vrcp.f32 %v473_v30  ;;  %v238_v38 = vmul.f32 %v1399_v31, %v1396_v21  ;;  %vm481_vm13 = vmor %vm479_vm12, %vm480_vm11  ;;  %v500_v53 = vand.u32 2147483648, %v473_v30  ;;  %v498_v56 = vand.u32 2147483647, %v473_v30 }
 0x43c   :  { %v476_v33 = vsub.f32 1.0, %v475_v27  ;;  %1023 = vrcp.f32 %v1401_v34  ;;  %vm494_vm5 = vweird.f32 %v473_v30  ;;  %vm243_vm9 = vweird.f32 %v1399_v31 }
 0x43d   :  { %v239_v32 = vsub.f32 1.0, %v238_v38  ;;  %v501_v62 = vor.u32 1.1754944e-38, %v500_v53  ;;  %vm499_vm8 = vcmp.eq.f32.partialorder %v498_v56, 8.507059e+37  ;;  %vm244_vm11 = vmor %vm242_vm10, %vm243_vm9  ;;  %vm247_vm12 = vcmp.eq.f32.partialorder %v246_v18, 8.507059e+37  ;;  %v727_v18 = vld [vmem:[%s1541_s3] sm:$0xff] }
 0x43e   :  { %v477_v36 = vmul.f32 %v1018_v26, %v476_v33 }
 0x43f   :  { %v240_v57 = vmul.f32 %v1399_v31, %v239_v32  ;;  %v991_v1 = vpop.permute.xlu2 %990 }
 0x440   :  { %v478_v40 = vadd.f32 %v1018_v26, %v477_v36  ;;  %v992_v16 = vunpack.i.l.bf16 %v991_v1 }
 0x441   :  { %v1022_v41 = vpop.eup %1021  ;;  %v241_v11 = vadd.f32 %v1399_v31, %v240_v57 }
 0x442   :  { %v490_v43 = vmul.f32 %v1022_v41, %v473_v30  ;;  %v482_v44 = vsel %vm481_vm13, %v1018_v26, %v478_v40  ;;  %v1406_v48 = vpop.xlane.xlu0 %594  ;;  %v1409_v51 = vpop.eup %1023  ;;  %vm495_vm3 = vweird.f32 %v1022_v41  ;;  %v249_v26 = vor.u32 1.1754944e-38, %v248_v13 }
 0x443   :  { %v487_v45 = vsel %vm484_vm14, %v486_v42, %v482_v44  ;;  %1025 = vrcp.f32 %v1406_v48  ;;  %v597_v59 = vmul.f32 %v1409_v51, %v1401_v34  ;;  %vm496_vm6 = vmor %vm494_vm5, %vm495_vm3  ;;  %v245_v25 = vsel %vm244_vm11, %v1399_v31, %v241_v11 }
 0x444   :  { %v491_v47 = vsub.f32 1.0, %v490_v43  ;;  %v488_v49 = vmul.f32 %v1377_v63, %v487_v45  ;;  %v250_v27 = vsel %vm247_vm12, %v249_v26, %v245_v25  ;;  %vm602_vm13 = vweird.f32 %v1409_v51  ;;  %v773_v25 = vld [vmem:[%s1543_s5 + $0x38] sm:$0xff]  ;;  %v772_v26 = vld [vmem:[%s1543_s5 + $0x30] sm:$0xff] }
 0x445   :  { %v598_v8 = vsub.f32 1.0, %v597_v59  ;;  %v607_v30 = vand.u32 2147483648, %v1401_v34  ;;  %vm601_vm14 = vweird.f32 %v1401_v34  ;;  %v251_v33 = vmul.f32 %v1367_v50, %v250_v27  ;;  %790 = vmatpush.msra.mxu3 %v773_v25  ;;  %v771_v27 = vld [vmem:[%s1543_s5 + $0x28] sm:$0xff] }
 0x446   :  { %v492_v55 = vmul.f32 %v1022_v41, %v491_v47  ;;  %950 = vmatmul.msk.f32.vlgmr.msrb.gmra.mxu3 %vm203_vm2, %v488_v49  ;;  %vm603_vm15 = vmor %vm601_vm14, %vm602_vm13  ;;  %v622_v39 = vand.u32 2147483648, %v1406_v48  ;;  %vm616_vm4 = vweird.f32 %v1406_v48  ;;  %v620_v34 = vand.u32 2147483647, %v1406_v48  ;;  %v1450_v47 = vld [vmem:[#allocation7] sm:$0xff] }
 0x447   :  { %v599_v20 = vmul.f32 %v1409_v51, %v598_v8  ;;  %v608_v36 = vor.u32 1.1754944e-38, %v607_v30  ;;  %1027 = vrcp.f32 %v1184_v60  ;;  %791 = vmatpush.msra.mxu3 %v772_v26  ;;  %v770_v30 = vld [vmem:[%s1543_s5 + $0x20] sm:$0xff]  ;;  %vm775_vm13 = vcmask 523264  }
 0x448   :  { %v493_v24 = vadd.f32 %v1022_v41, %v492_v55 }
 0x449   :  { %v1026_v12 = vpop.eup %1025  ;;  %v600_v52 = vadd.f32 %v1409_v51, %v599_v20  ;;  %792 = vmatpush.msra.mxu3 %v771_v27 }
 0x44a   :  { %v986_v63 = vpop.permute.xlu1 %985  ;;  %v497_v0 = vsel %vm496_vm6, %v1022_v41, %v493_v24  ;;  %v612_v23 = vmul.f32 %v1026_v12, %v1406_v48  ;;  %vm617_vm3 = vweird.f32 %v1026_v12  ;;  %v623_v41 = vor.u32 1.1754944e-38, %v622_v39 }
 0x44b   :  { %v987_v2 = vunpack.i.l.bf16 %v986_v63  ;;  %v502_v3 = vsel %vm499_vm8, %v501_v62, %v497_v0  ;;  %v988_v6 = vunpack.i.h.bf16 %v986_v63  ;;  %v604_v31 = vsel %vm603_vm15, %v1409_v51, %v600_v52  ;;  %vm618_vm5 = vmor %vm616_vm4, %vm617_vm3  ;;  %793 = vmatpush.msra.mxu3 %v770_v30 }
 0x44c   :  { %v503_v9 = vmul.f32 %v1386_v14, %v502_v3  ;;  %v993_v14 = vunpack.i.h.bf16 %v991_v1  ;;  %v613_v21 = vsub.f32 1.0, %v612_v23  ;;  %v609_v37 = vsel %vm606_vm1, %v608_v36, %v604_v31  ;;  %v769_v31 = vld [vmem:[%s1543_s5 + $0x18] sm:$0xff] }
 0x44d   :  { %404 = vmatpush.msrb.mxu1 %v987_v2  ;;  %v610_v40 = vmul.f32 %v1382_v10, %v609_v37  ;;  %vm621_vm6 = vcmp.eq.f32.partialorder %v620_v34, 8.507059e+37  ;;  %v665_v48 = vperm.slane %v1450_v47, 0  ;;  %v1028_v61 = vpop.eup %1027  ;;  %794 = vmatpush.msra.mxu3 %v769_v31 }
 0x44e   :  { %951 = vmatmul.msk.f32.gmra.mxu3 %vm203_vm2, %v503_v9  ;;  %v614_v35 = vmul.f32 %v1026_v12, %v613_v21 }
 0x44f   :  { %405 = vmatpush.msrb.mxu1 %v988_v6  ;;  %v730_v6 = vld [vmem:[%s1541_s3 + $0x18] sm:$0xff] }
 0x450   :  { %944 = vmatmul.msk.f32.vlgmr.msrb.gmra.mxu1 %vm203_vm2, %v236_v17  ;;  %v615_v38 = vadd.f32 %v1026_v12, %v614_v35  ;;  %753 = vmatpush.msra.mxu2 %v730_v6  ;;  %v728_v17 = vld [vmem:[%s1541_s3 + $0x8] sm:$0xff] }
 0x451   :  { %654 = vmatpush.msra.mxu1 %v992_v16  ;;  %v729_v16 = vld [vmem:[%s1541_s3 + $0x10] sm:$0xff] }
 0x452   :  { %v619_v50 = vsel %vm618_vm5, %v1026_v12, %v615_v38  ;;  %754 = vmatpush.msra.mxu2 %v729_v16 }
 0x453   :  { %655 = vmatpush.msra.mxu1 %v993_v14  ;;  %v624_v42 = vsel %vm621_vm6, %v623_v41, %v619_v50  ;;  %v721_v50 = vperm.slane %v1450_v47, 2 }
 0x454   :  { %v625_v43 = vmul.f32 %v1390_v15, %v624_v42  ;;  %755 = vmatpush.msra.mxu2 %v728_v17 }
 0x456   :  { %756 = vmatpush.msra.mxu2 %v727_v18 }
 0x458   :  { %945 = vmatmul.msk.f32.gmra.mxu1 %vm203_vm2, %v251_v33 }
 0x460   :  { %956 = vmatmul.msk.f32.vlgmr.msra.gmra.mxu1 %vm203_vm2, %v610_v40 }
 0x468   :  { %957 = vmatmul.msk.f32.gmra.mxu1 %vm203_vm2, %v625_v43  ;;  %vm681_vm2 = vweird.f32 %v1028_v61 }
 0x4c9   :  { %v527_v46 = vpop.f32.mrf.mxu3 }
 0x4cd   :  { %v407_v44 = vpop.f32.mrf.mxu1 }
 0x4ce   :  { %v408_v45 = vadd.f32 %v407_v44, %v1339_v22  ;;  %v724_v44 = vperm.slane %v1450_v47, 3 }
 0x4d0   :  { %v533_v10 = vadd.f32 %v527_v46, %v408_v45 }
 0x4d1   :  { %v530_v15 = vpop.f32.mrf.mxu3 }
 0x4d5   :  { %v410_v32 = vpop.f32.mrf.mxu1 }
 0x4d6   :  { %v411_v19 = vadd.f32 %v410_v32, %v1353_v29  ;;  %v677_v29 = vmul.f32 32.0, %v1028_v61 }
 0x4d8   :  { %v534_v56 = vadd.f32 %v530_v15, %v411_v19  ;;  %v678_v62 = vsub.f32 1.0, %v677_v29  ;;  %v767_v15 = vld [vmem:[%s1543_s5 + $0x8] sm:$0xff] }
 0x4da   :  { %v679_v63 = vmul.f32 %v1028_v61, %v678_v62 }
 0x4dd   :  { %v657_v49 = vpop.f32.mrf.mxu1 }
 0x4de   :  { %v663_v51 = vadd.f32 %v657_v49, %v533_v10 }
 0x4e0   :  { %v666_v53 = vadd.f32 %v665_v48, %v663_v51 }
 0x4e2   :  { %v668_v54 = vadd.f32 %v666_v53, %v1261_v4  ;;  %v680_v4 = vadd.f32 %v1028_v61, %v679_v63 }
 0x4e4   :  { %v670_v55 = vsel %vm105_vm0, %v668_v54, 0.0  ;;  %v1458_v0 = vsel %vm681_vm2, %v1028_v61, %v680_v4  ;;  %v774_v61 = vperm.slane %v1450_v47, 1 }
 0x4e5   :  { %671 = vadd.xlane.f32.xlu0 %v670_v55  ;;  %v660_v57 = vpop.f32.mrf.mxu1  ;;  %v766_v55 = vld [vmem:[%s1543_s5] sm:$0xff] }
 0x4e6   :  { %v664_v22 = vadd.f32 %v660_v57, %v534_v56  ;;  %v994_v56 = vld [vmem:[%s1542_s4] ss:$0 sm:$0xff]  ;;  %s1185_s4 = smov [#allocation10]  }
 0x4e8   :  { %v667_v58 = vadd.f32 %v665_v48, %v664_v22 }
 0x4ea   :  { %v669_v59 = vadd.f32 %v667_v58, %v1265_v5 }
 0x4ec   :  { %v673_v24 = vsel %vm105_vm0, %v669_v59, 0.0 }
 0x4ed   :  { %674 = vadd.xlane.f32.xlu0 %v673_v24 }
 0x558   :  { %v672_v1 = vpop.xlane.xlu0 %671 }
 0x559   :  { %v683_v2 = vmul.f32 %v1458_v0, %v672_v1 }
 0x55b   :  { %v685_v3 = vsub.f32 %v668_v54, %v683_v2  ;;  %v768_v54 = vld [vmem:[%s1543_s5 + $0x10] sm:$0xff]  ;;  %s913_s5 = sshll.u32 %s1185_s4, 4  ;;  %s914_s5 = int_to_ptr.vmem [resolvable:$true] %s913_s5 }
 0x55c   :  { %795 = vmatpush.msra.mxu3 %v768_v54 }
 0x55d   :  { %v687_v7 = vmul.f32 %v685_v3, %v685_v3 }
 0x55e   :  { %796 = vmatpush.msra.mxu3 %v767_v15 }
 0x55f   :  { %v689_v5 = vsel %vm105_vm0, %v687_v7, 0.0 }
 0x560   :  { %690 = vadd.xlane.f32.xlu1 %v689_v5  ;;  %v675_v8 = vpop.xlane.xlu0 %674  ;;  %797 = vmatpush.msra.mxu3 %v766_v55 }
 0x561   :  { %v684_v9 = vmul.f32 %v1458_v0, %v675_v8 }
 0x563   :  { %v686_v11 = vsub.f32 %v669_v59, %v684_v9 }
 0x565   :  { %v688_v12 = vmul.f32 %v686_v11, %v686_v11 }
 0x567   :  { %v692_v13 = vsel %vm105_vm0, %v688_v12, 0.0 }
 0x568   :  { %693 = vadd.xlane.f32.xlu0 %v692_v13 }
 0x5d3   :  { %v691_v14 = vpop.xlane.xlu1 %690 }
 0x5d4   :  { %v695_v20 = vmul.f32 %v691_v14, %v1458_v0 }
 0x5d6   :  { %v697_v23 = vadd.f32 1e-05, %v695_v20 }
 0x5d8   :  { %1029 = vrsqrt.f32 %v697_v23  ;;  %vm705_vm8 = vweird.f32 %v697_v23 }
 0x5db   :  { %v694_v52 = vpop.xlane.xlu0 %693 }
 0x5dc   :  { %v696_v21 = vmul.f32 %v694_v52, %v1458_v0 }
 0x5de   :  { %v1030_v28 = vpop.eup %1029  ;;  %v698_v33 = vadd.f32 1e-05, %v696_v21 }
 0x5df   :  { %v700_v35 = vmul.f32 %v1030_v28, %v697_v23  ;;  %vm706_vm7 = vweird.f32 %v1030_v28 }
 0x5e0   :  { %1031 = vrsqrt.f32 %v698_v33  ;;  %vm707_vm9 = vmor %vm705_vm8, %vm706_vm7  ;;  %vm715_vm11 = vweird.f32 %v698_v33 }
 0x5e1   :  { %v701_v36 = vmul.f32 %v1030_v28, %v700_v35 }
 0x5e3   :  { %v702_v37 = vmul.f32 0.5, %v701_v36 }
 0x5e5   :  { %v703_v38 = vsub.f32 1.5, %v702_v37  ;;  %v851_v37 = vperm.slane %v1450_v47, 4 }
 0x5e6   :  { %v1032_v39 = vpop.eup %1031 }
 0x5e7   :  { %v704_v40 = vmul.f32 %v1030_v28, %v703_v38  ;;  %v710_v34 = vmul.f32 %v1032_v39, %v698_v33  ;;  %vm716_vm10 = vweird.f32 %v1032_v39 }
 0x5e8   :  { %vm717_vm12 = vmor %vm715_vm11, %vm716_vm10 }
 0x5e9   :  { %v708_v41 = vsel %vm707_vm9, %v1030_v28, %v704_v40  ;;  %v711_v42 = vmul.f32 %v1032_v39, %v710_v34  ;;  %v854_v34 = vperm.slane %v1450_v47, 5 }
 0x5ea   :  { %v719_v43 = vmul.f32 %v708_v41, %v685_v3 }
 0x5eb   :  { %v712_v32 = vmul.f32 0.5, %v711_v42 }
 0x5ec   :  { %v722_v45 = vmul.f32 %v721_v50, %v719_v43 }
 0x5ed   :  { %v713_v46 = vsub.f32 1.5, %v712_v32 }
 0x5ee   :  { %v725_v10 = vadd.f32 %v724_v44, %v722_v45 }
 0x5ef   :  { %v714_v48 = vmul.f32 %v1032_v39, %v713_v46 }
 0x5f0   :  { %958 = vmatmul.msk.f32.vlgmr.msra.gmra.mxu2 %vm105_vm0, %v725_v10 }
 0x5f1   :  { %v718_v49 = vsel %vm717_vm12, %v1032_v39, %v714_v48 }
 0x5f2   :  { %v720_v51 = vmul.f32 %v718_v49, %v686_v11 }
 0x5f4   :  { %v723_v19 = vmul.f32 %v721_v50, %v720_v51 }
 0x5f6   :  { %v726_v53 = vadd.f32 %v724_v44, %v723_v19 }
 0x5f8   :  { %959 = vmatmul.msk.f32.gmra.mxu2 %vm105_vm0, %v726_v53 }
 0x673   :  { %v758_v57 = vpop.f32.mrf.mxu2 }
 0x674   :  { %v759_v22 = vadd.f32 %v994_v56, %v758_v57 }
 0x676   :  { %v764_v58 = vmax.f32 %v759_v22, 0.0 }
 0x678   :  { %960 = vmatmul.msk.f32.vlgmr.msra.gmra.mxu3 %vm775_vm13, %v764_v58 }
 0x67b   :  { %v761_v59 = vpop.f32.mrf.mxu2 }
 0x67c   :  { %v762_v24 = vadd.f32 %v994_v56, %v761_v59 }
 0x67e   :  { %v765_v60 = vmax.f32 %v762_v24, 0.0 }
 0x680   :  { %961 = vmatmul.msk.f32.gmra.mxu3 %vm775_vm13, %v765_v60 }
 0x6fb   :  { %v799_v29 = vpop.f32.mrf.mxu3 }
 0x6fc   :  { %v800_v62 = vadd.f32 %v799_v29, %v774_v61 }
 0x6fe   :  { %v805_v63 = vadd.f32 %v800_v62, %v725_v10 }
 0x700   :  { %v807_v4 = vsel %vm105_vm0, %v805_v63, 0.0 }
 0x701   :  { %808 = vadd.xlane.f32.xlu2 %v807_v4 }
 0x703   :  { %v802_v1 = vpop.f32.mrf.mxu3 }
 0x704   :  { %v803_v2 = vadd.f32 %v802_v1, %v774_v61 }
 0x706   :  { %v806_v3 = vadd.f32 %v803_v2, %v726_v53 }
 0x708   :  { %v810_v7 = vsel %vm105_vm0, %v806_v3, 0.0 }
 0x709   :  { %811 = vadd.xlane.f32.xlu0 %v810_v7 }
 0x774   :  { %v809_v5 = vpop.xlane.xlu2 %808 }
 0x775   :  { %v813_v8 = vmul.f32 %v809_v5, %v1458_v0 }
 0x777   :  { %v815_v9 = vsub.f32 %v805_v63, %v813_v8 }
 0x779   :  { %v817_v11 = vmul.f32 %v815_v9, %v815_v9 }
 0x77b   :  { %v819_v12 = vsel %vm105_vm0, %v817_v11, 0.0 }
 0x77c   :  { %820 = vadd.xlane.f32.xlu0 %v819_v12  ;;  %v812_v13 = vpop.xlane.xlu0 %811 }
 0x77d   :  { %v814_v6 = vmul.f32 %v812_v13, %v1458_v0 }
 0x77f   :  { %v816_v16 = vsub.f32 %v806_v3, %v814_v6 }
 0x781   :  { %v818_v17 = vmul.f32 %v816_v16, %v816_v16 }
 0x783   :  { %v822_v18 = vsel %vm105_vm0, %v818_v17, 0.0 }
 0x784   :  { %823 = vadd.xlane.f32.xlu0 %v822_v18 }
 0x7ef   :  { %v821_v14 = vpop.xlane.xlu0 %820 }
 0x7f0   :  { %v825_v20 = vmul.f32 %v821_v14, %v1458_v0 }
 0x7f2   :  { %v827_v23 = vadd.f32 1e-05, %v825_v20 }
 0x7f4   :  { %1033 = vrsqrt.f32 %v827_v23  ;;  %vm835_vm15 = vweird.f32 %v827_v23 }
 0x7f7   :  { %v824_v25 = vpop.xlane.xlu0 %823 }
 0x7f8   :  { %v826_v26 = vmul.f32 %v824_v25, %v1458_v0 }
 0x7fa   :  { %v1034_v27 = vpop.eup %1033  ;;  %v828_v52 = vadd.f32 1e-05, %v826_v26 }
 0x7fb   :  { %v830_v21 = vmul.f32 %v1034_v27, %v827_v23  ;;  %vm836_vm14 = vweird.f32 %v1034_v27 }
 0x7fc   :  { %1035 = vrsqrt.f32 %v828_v52  ;;  %vm837_vm1 = vmor %vm835_vm15, %vm836_vm14  ;;  %vm845_vm4 = vweird.f32 %v828_v52 }
 0x7fd   :  { %v831_v30 = vmul.f32 %v1034_v27, %v830_v21 }
 0x7ff   :  { %v832_v28 = vmul.f32 0.5, %v831_v30 }
 0x801   :  { %v833_v33 = vsub.f32 1.5, %v832_v28 }
 0x802   :  { %v1036_v31 = vpop.eup %1035 }
 0x803   :  { %v834_v35 = vmul.f32 %v1034_v27, %v833_v33  ;;  %v840_v36 = vmul.f32 %v1036_v31, %v828_v52  ;;  %vm846_vm3 = vweird.f32 %v1036_v31 }
 0x804   :  { %vm847_vm5 = vmor %vm845_vm4, %vm846_vm3 }
 0x805   :  { %v841_v38 = vmul.f32 %v1036_v31, %v840_v36  ;;  %v838_v39 = vsel %vm837_vm1, %v1034_v27, %v834_v35 }
 0x806   :  { %v849_v40 = vmul.f32 %v838_v39, %v815_v9  ;;  %v901_v9 = vperm.slane %v1450_v47, 6 }
 0x807   :  { %v842_v50 = vmul.f32 0.5, %v841_v38 }
 0x808   :  { %v852_v41 = vmul.f32 %v851_v37, %v849_v40 }
 0x809   :  { %v843_v42 = vsub.f32 1.5, %v842_v50 }
 0x80a   :  { %v855_v43 = vadd.f32 %v854_v34, %v852_v41 }
 0x80b   :  { %v844_v44 = vmul.f32 %v1036_v31, %v843_v42 }
 0x80c   :  { %v857_v32 = vsel %vm105_vm0, %v855_v43, 0.0 }
 0x80d   :  { %858 = vadd.xlane.f32.xlu0 %v857_v32  ;;  %v848_v45 = vsel %vm847_vm5, %v1036_v31, %v844_v44 }
 0x80e   :  { %v850_v46 = vmul.f32 %v848_v45, %v816_v16 }
 0x810   :  { %v853_v10 = vmul.f32 %v851_v37, %v850_v46 }
 0x812   :  { %v856_v48 = vadd.f32 %v854_v34, %v853_v10 }
 0x814   :  { %v860_v49 = vsel %vm105_vm0, %v856_v48, 0.0 }
 0x815   :  { %861 = vadd.xlane.f32.xlu0 %v860_v49 }
 0x880   :  { %v859_v51 = vpop.xlane.xlu0 %858 }
 0x881   :  { %v863_v19 = vmul.f32 %v859_v51, %v1458_v0 }
 0x883   :  { %v865_v53 = vsub.f32 %v855_v43, %v863_v19 }
 0x885   :  { %v867_v54 = vmul.f32 %v865_v53, %v865_v53 }
 0x887   :  { %v869_v15 = vsel %vm105_vm0, %v867_v54, 0.0 }
 0x888   :  { %870 = vadd.xlane.f32.xlu1 %v869_v15  ;;  %v862_v55 = vpop.xlane.xlu0 %861 }
 0x889   :  { %v864_v56 = vmul.f32 %v862_v55, %v1458_v0 }
 0x88b   :  { %v866_v57 = vsub.f32 %v856_v48, %v864_v56 }
 0x88d   :  { %v868_v22 = vmul.f32 %v866_v57, %v866_v57 }
 0x88f   :  { %v872_v58 = vsel %vm105_vm0, %v868_v22, 0.0 }
 0x890   :  { %873 = vadd.xlane.f32.xlu2 %v872_v58 }
 0x8fb   :  { %v871_v59 = vpop.xlane.xlu1 %870 }
 0x8fc   :  { %v875_v24 = vmul.f32 %v871_v59, %v1458_v0 }
 0x8fe   :  { %v877_v60 = vadd.f32 1e-05, %v875_v24 }
 0x900   :  { %1037 = vrsqrt.f32 %v877_v60  ;;  %vm885_vm2 = vweird.f32 %v877_v60 }
 0x903   :  { %v874_v61 = vpop.xlane.xlu2 %873 }
 0x904   :  { %v876_v29 = vmul.f32 %v874_v61, %v1458_v0  ;;  %v904_v0 = vperm.slane %v1450_v47, 7 }
 0x906   :  { %v1038_v62 = vpop.eup %1037  ;;  %v878_v63 = vadd.f32 1e-05, %v876_v29 }
 0x907   :  { %v880_v4 = vmul.f32 %v1038_v62, %v877_v60  ;;  %vm886_vm6 = vweird.f32 %v1038_v62 }
 0x908   :  { %1039 = vrsqrt.f32 %v878_v63  ;;  %vm887_vm7 = vmor %vm885_vm2, %vm886_vm6  ;;  %vm895_vm9 = vweird.f32 %v878_v63 }
 0x909   :  { %v881_v1 = vmul.f32 %v1038_v62, %v880_v4 }
 0x90b   :  { %v882_v2 = vmul.f32 0.5, %v881_v1 }
 0x90d   :  { %v883_v3 = vsub.f32 1.5, %v882_v2 }
 0x90e   :  { %v1040_v7 = vpop.eup %1039 }
 0x90f   :  { %v884_v5 = vmul.f32 %v1038_v62, %v883_v3  ;;  %v890_v8 = vmul.f32 %v1040_v7, %v878_v63  ;;  %vm896_vm8 = vweird.f32 %v1040_v7 }
 0x910   :  { %vm897_vm10 = vmor %vm895_vm9, %vm896_vm8 }
 0x911   :  { %v888_v11 = vsel %vm887_vm7, %v1038_v62, %v884_v5  ;;  %v891_v12 = vmul.f32 %v1040_v7, %v890_v8 }
 0x912   :  { %v899_v13 = vmul.f32 %v888_v11, %v865_v53 }
 0x913   :  { %v892_v6 = vmul.f32 0.5, %v891_v12 }
 0x914   :  { %v902_v16 = vmul.f32 %v901_v9, %v899_v13 }
 0x915   :  { %v893_v17 = vsub.f32 1.5, %v892_v6 }
 0x916   :  { %v905_v18 = vadd.f32 %v904_v0, %v902_v16 }
 0x917   :  { %v894_v14 = vmul.f32 %v1040_v7, %v893_v17 }
 0x918   :  { %907 = vst.msk [vmem:[#allocation10] sm:$0xff] %vm105_vm0, %v905_v18 }
 0x919   :  { %v898_v20 = vsel %vm897_vm10, %v1040_v7, %v894_v14 }
 0x91a   :  { %v900_v23 = vmul.f32 %v898_v20, %v866_v57 }
 0x91c   :  { %v903_v25 = vmul.f32 %v901_v9, %v900_v23 }
 0x91e   :  { %v906_v47 = vadd.f32 %v904_v0, %v903_v25 }
 0x920   :  { %908 = vst.msk [vmem:[#allocation10 + $0x8] sm:$0xff] %vm105_vm0, %v906_v47 }
 0x921   :  { %921 = dma.vmem_to_hbm [thread:$0]  %s914_s5, 256, %s916_s7, [#allocation4], %s1171_s15, %s1171_s15, %s1172_s16  }
 0x922   :  { %1167 = dma.done.wait [#allocation4], 256  }
 0x923   :  { %1168 = vsyncadd [#allocation4], 4294967040 }
 0x924   :  { %926 = vsyncpa [#allocation3], 1 }
 0x925   :  { %927 = vsyncpa [#allocation6], 1 }
 0x926   :  { %928 = vsyncpa [#allocation9], 1 }
 0x927   :  { %929 = vsyncpa [#allocation4], 1 }

</bundles_post_ra>
